<compile_context>
chip_gen: v7x
topology: tpu7x:2x2x1
jax: 0.10.0
libtpu: 0.0.40
codegen_flags: <defaults>
</compile_context>

<pallas_src>
import jax
import jax.numpy as jnp
from jax.experimental import pallas as pl
from jax.experimental.pallas import tpu as pltpu


def _sage_kernel(self_ref, agg_ref, w_self_ref, w_agg_ref, out_ref):
    # Two MXU matmuls, f32 accumulation, fused ReLU.
    acc = jnp.dot(self_ref[...], w_self_ref[...],
                  preferred_element_type=jnp.float32)
    acc = acc + jnp.dot(agg_ref[...], w_agg_ref[...],
                        preferred_element_type=jnp.float32)
    out_ref[...] = jnp.maximum(acc, 0.0).astype(out_ref.dtype)


def _sage_gcn_kernel(agg_ref, w_ref, out_ref):
    # gcn mode: single matmul, fused ReLU.  self_feats is never touched.
    acc = jnp.dot(agg_ref[...], w_ref[...],
                  preferred_element_type=jnp.float32)
    out_ref[...] = jnp.maximum(acc, 0.0).astype(out_ref.dtype)


def _round_up(x, m):
    return (x + m - 1) // m * m


def sage_layer_forward(self_feats, aggregate_feats, weight, gcn=False, *,
                       block_rows=512):
    """Pallas implementation of SageLayer.forward.

    self_feats:      (N, D) float32 (ignored when gcn=True)
    aggregate_feats: (N, D) float32
    weight:          (D, O) if gcn else (2*D, O)
    returns:         (N, O) float32
    """
    n, d = aggregate_feats.shape
    o = weight.shape[1]
    dtype = aggregate_feats.dtype
    itemsize = jnp.dtype(dtype).itemsize

    # Row tile: multiple of 8 (sublane), clamped for tiny graphs.
    tm = min(block_rows, max(8, _round_up(n, 8)))
    grid = (pl.cdiv(n, tm),)

    compiler_params = pltpu.CompilerParams(
        dimension_semantics=("parallel",),   # rows independent -> megacore-shardable
        vmem_limit_bytes=48 * 1024 * 1024,   # > v5e 16 MiB default, < v7x 64 MiB physical
    )

    act_spec = pl.BlockSpec((tm, d), lambda i: (i, 0))
    out_spec = pl.BlockSpec((tm, o), lambda i: (i, 0))
    out_shape = jax.ShapeDtypeStruct((n, o), dtype)

    if gcn:
        cost = pl.CostEstimate(
            flops=2 * n * d * o,
            transcendentals=0,
            bytes_accessed=(n * d + d * o + n * o) * itemsize)
        return pl.pallas_call(
            _sage_gcn_kernel,
            out_shape=out_shape,
            grid_spec=pltpu.PrefetchScalarGridSpec(
                num_scalar_prefetch=0,
                grid=grid,
                in_specs=[act_spec,
                          pl.BlockSpec((d, o), lambda i: (0, 0))],
                out_specs=out_spec),
            compiler_params=compiler_params,
            cost_estimate=cost,
        )(aggregate_feats, weight)

    # Non-gcn path.  Present the two halves of the (2D, O) weight as BlockSpec
    # views of the SAME HBM array (no wrapper-side slice copies) whenever D is
    # sublane-aligned; otherwise fall back to wrapper slicing (rare, tiny).
    if d % 8 == 0:
        w_self_arg, w_agg_arg = weight, weight
        w_self_spec = pl.BlockSpec((d, o), lambda i: (0, 0))  # rows [0, D)
        w_agg_spec = pl.BlockSpec((d, o), lambda i: (1, 0))   # rows [D, 2D)
    else:
        w_self_arg, w_agg_arg = weight[:d, :], weight[d:, :]
        w_self_spec = pl.BlockSpec((d, o), lambda i: (0, 0))
        w_agg_spec = pl.BlockSpec((d, o), lambda i: (0, 0))

    cost = pl.CostEstimate(
        flops=2 * n * (2 * d) * o,
        transcendentals=0,
        bytes_accessed=(2 * n * d + 2 * d * o + n * o) * itemsize)

    return pl.pallas_call(
        _sage_kernel,
        out_shape=out_shape,
        grid_spec=pltpu.PrefetchScalarGridSpec(
            num_scalar_prefetch=0,
            grid=grid,
            in_specs=[act_spec, act_spec, w_self_spec, w_agg_spec],
            out_specs=out_spec),
        compiler_params=compiler_params,
        cost_estimate=cost,
    )(self_feats, aggregate_feats, w_self_arg, w_agg_arg)


def xavier_uniform(key, shape, dtype=jnp.float32):
    fan_in, fan_out = shape
    bound = (6.0 / (fan_in + fan_out)) ** 0.5
    return jax.random.uniform(key, shape, dtype=dtype, minval=-bound, maxval=bound)


if __name__ == "__main__":
    # Small deterministic example consistent with the module:
    #   N nodes = 8, input_size D = 32, out_size O = 16
    N, D, O = 8, 32, 16
    key = jax.random.PRNGKey(0)
    k_self, k_agg, k_w, k_wg = jax.random.split(key, 4)

    self_feats = jax.random.normal(k_self, (N, D), dtype=jnp.float32)
    aggregate_feats = jax.random.normal(k_agg, (N, D), dtype=jnp.float32)

    # gcn=False: weight is (2*D, O)
    weight = xavier_uniform(k_w, (2 * D, O))
    out = sage_layer_forward(self_feats, aggregate_feats, weight, gcn=False)
    out = jax.block_until_ready(out)
    combined = jnp.concatenate([self_feats, aggregate_feats], axis=1)
    ref = jnp.maximum(combined @ weight, 0.0)
    assert out.shape == (N, O)
    assert jnp.allclose(out, ref, atol=1e-5, rtol=1e-5), "mismatch vs reference (gcn=False)"

    # gcn=True: weight is (D, O); self_feats ignored.
    weight_g = xavier_uniform(k_wg, (D, O))
    out_g = sage_layer_forward(self_feats, aggregate_feats, weight_g, gcn=True)
    out_g = jax.block_until_ready(out_g)
    ref_g = jnp.maximum(aggregate_feats @ weight_g, 0.0)
    assert out_g.shape == (N, O)
    assert jnp.allclose(out_g, ref_g, atol=1e-5, rtol=1e-5), "mismatch vs reference (gcn=True)"

    print("KERNEL_OK")
</pallas_src>

<mosaic_0001>
module attributes {stable_mosaic.version = 11 : i64} {
  func.func @_sage_kernel(%arg0: i32, %arg1: memref<8x32xf32, #tpu.memory_space<vmem>>, %arg2: memref<8x32xf32, #tpu.memory_space<vmem>>, %arg3: memref<32x16xf32, #tpu.memory_space<vmem>>, %arg4: memref<32x16xf32, #tpu.memory_space<vmem>>, %arg5: memref<8x16xf32, #tpu.memory_space<vmem>>) attributes {dimension_semantics = [#tpu.dimension_semantics<parallel>], iteration_bounds = array<i64: 1>, scalar_prefetch = 0 : i64, scratch_operands = 0 : i64, tpu.core_type = #tpu.core_type<tc>, window_params = [{transform_indices = @transform_0, window_bounds = array<i64: 8, 32>}, {transform_indices = @transform_1, window_bounds = array<i64: 8, 32>}, {transform_indices = @transform_2, window_bounds = array<i64: 32, 16>}, {transform_indices = @transform_3, window_bounds = array<i64: 32, 16>}, {transform_indices = @transform_4, window_bounds = array<i64: 8, 16>}]} {
    %c0 = arith.constant 0 : index
    %c0_0 = arith.constant 0 : index
    %0 = vector.load %arg1[%c0, %c0_0] : memref<8x32xf32, #tpu.memory_space<vmem>>, vector<8x32xf32>
    %c0_1 = arith.constant 0 : index
    %c0_2 = arith.constant 0 : index
    %1 = vector.load %arg3[%c0_1, %c0_2] : memref<32x16xf32, #tpu.memory_space<vmem>>, vector<32x16xf32>
    %cst = arith.constant dense<0.000000e+00> : vector<8x16xf32>
    %2 = tpu.matmul %0, %1, %cst {dimension_numbers = #tpu.dot_dimension_numbers<[1], [0], [0], [1], [0, 0, 1, 1], [], []>} : vector<8x32xf32>, vector<32x16xf32>, vector<8x16xf32> -> vector<8x16xf32>
    %c0_3 = arith.constant 0 : index
    %c0_4 = arith.constant 0 : index
    %3 = vector.load %arg2[%c0_3, %c0_4] : memref<8x32xf32, #tpu.memory_space<vmem>>, vector<8x32xf32>
    %c0_5 = arith.constant 0 : index
    %c0_6 = arith.constant 0 : index
    %4 = vector.load %arg4[%c0_5, %c0_6] : memref<32x16xf32, #tpu.memory_space<vmem>>, vector<32x16xf32>
    %cst_7 = arith.constant dense<0.000000e+00> : vector<8x16xf32>
    %5 = tpu.matmul %3, %4, %cst_7 {dimension_numbers = #tpu.dot_dimension_numbers<[1], [0], [0], [1], [0, 0, 1, 1], [], []>} : vector<8x32xf32>, vector<32x16xf32>, vector<8x16xf32> -> vector<8x16xf32>
    %6 = arith.addf %2, %5 : vector<8x16xf32>
    %cst_8 = arith.constant 0.000000e+00 : f32
    %7 = vector.broadcast %cst_8 : f32 to vector<8x16xf32>
    %8 = arith.maximumf %6, %7 : vector<8x16xf32>
    %c0_9 = arith.constant 0 : index
    %c0_10 = arith.constant 0 : index
    %9 = vector.load %arg5[%c0_9, %c0_10] : memref<8x16xf32, #tpu.memory_space<vmem>>, vector<8x16xf32>
    tpu.vector_store %arg5[%c0_9, %c0_10], %8 {strides = array<i32>} : memref<8x16xf32, #tpu.memory_space<vmem>>, vector<8x16xf32>,
    return
  }
  func.func @transform_0(%arg0: i32) -> (i32, i32) {
    %c0_i32 = arith.constant 0 : i32
    %c0_i32_0 = arith.constant 0 : i32
    return %arg0, %c0_i32 : i32, i32
  }
  func.func @transform_1(%arg0: i32) -> (i32, i32) {
    %c0_i32 = arith.constant 0 : i32
    %c0_i32_0 = arith.constant 0 : i32
    return %arg0, %c0_i32 : i32, i32
  }
  func.func @transform_2(%arg0: i32) -> (i32, i32) {
    %c0_i32 = arith.constant 0 : i32
    %c0_i32_0 = arith.constant 0 : i32
    %c0_i32_1 = arith.constant 0 : i32
    return %c0_i32, %c0_i32_0 : i32, i32
  }
  func.func @transform_3(%arg0: i32) -> (i32, i32) {
    %c1_i32 = arith.constant 1 : i32
    %c0_i32 = arith.constant 0 : i32
    %c0_i32_0 = arith.constant 0 : i32
    return %c1_i32, %c0_i32 : i32, i32
  }
  func.func @transform_4(%arg0: i32) -> (i32, i32) {
    %c0_i32 = arith.constant 0 : i32
    %c0_i32_0 = arith.constant 0 : i32
    return %arg0, %c0_i32 : i32, i32
  }
}

</mosaic_0001>

<bundles_post_ra>
// kernel: tpu_custom_call.1
= control target key start
LH: loop header
LB: loop body
LE: loop exit
PB: predicated region body
PF: predicated region fallthrough
CT: control target
= control target key end

     0   :  { %v274_v3 = vmov 0.0|0.0   ;;  %vm275_vm0 = vmmov 0   ;;  %v276_v11 = vmov 0.0   ;;  %s345_s0 = inlined_call_operand.vmem [shape: f32[8,32], index: 0, kind: input, shape index: {}]   ;;  %s346_s1 = inlined_call_operand.vmem [shape: f32[8,32], index: 1, kind: input, shape index: {}]   ;;  %s347_s2 = inlined_call_operand.vmem [shape: f32[64,16], index: 2, kind: input, shape index: {}]   ;;  %s348_s3 = inlined_call_operand.vmem [shape: f32[64,16], index: 3, kind: input, shape index: {}]   ;;  %s349_s4 = inlined_call_operand.hbm [shape: f32[8,16], index: 4, kind: output, shape index: {}]  }
   0x1   :  { %v195_v0 = vld [vmem:[%s348_s3 + $0x20] sm:$0xff]  ;;  %v196_v1 = vld [vmem:[%s348_s3 + $0x28] sm:$0xff]  ;;  %233 = vmatprep.subr.bf16.mxu1 %v274_v3  ;;  %239 = vmatprep.subr.bf16.mxu0 %v274_v3  ;;  %v197_v6 = vld [vmem:[%s348_s3 + $0x30] sm:$0xff] }
   0x2   :  { %v22_v2 = vld [vmem:[%s347_s2] sm:$0xff]  ;;  %v234_v4 = vpack.c.bf16 %v196_v1, %v195_v0  ;;  %v23_v5 = vld [vmem:[%s347_s2 + $0x8] sm:$0xff]  ;;  %v198_v7 = vld [vmem:[%s348_s3 + $0x38] sm:$0xff]  ;;  %219 = vmatprep.mubr.msk.f32.mxu1 %vm275_vm0, %v276_v11  ;;  %230 = vmatprep.mubr.msk.f32.mxu0 %vm275_vm0, %v276_v11 }
   0x3   :  { %v240_v8 = vpack.c.bf16 %v23_v5, %v22_v2  ;;  %v24_v9 = vld [vmem:[%s347_s2 + $0x10] sm:$0xff]  ;;  %v25_v10 = vld [vmem:[%s347_s2 + $0x18] sm:$0xff]  ;;  %v237_v12 = vpack.c.bf16 %v198_v7, %v197_v6 }
   0x4   :  { %235 = vmatpush3.bf16.msra.mxu1 %v234_v4 }
   0x5   :  { %9 = vsyncpa [#allocation3], 0  ;;  %241 = vmatpush3.bf16.msra.mxu0 %v240_v8  ;;  %236 = vmatprep.subr.bf16.mxu1 %v274_v3  ;;  %v243_v13 = vpack.c.bf16 %v25_v10, %v24_v9  ;;  %v26_v14 = vld [vmem:[%s346_s1] sm:$0xff]  ;;  %vm31_vm1 = vcmask 261120   ;;  %s277_s7 = smov [#allocation2]   ;;  %vm179_vm2 = vcmask 130048  }
   0x6   :  { %242 = vmatprep.subr.bf16.mxu0 %v274_v3  ;;  %v21_v15 = vld [vmem:[%s345_s0] sm:$0xff]  ;;  %s187_s8 = sshll.u32 %s277_s7, 4  ;;  %s188_s8 = int_to_ptr.vmem [resolvable:$true] %s187_s8 }
   0x7   :  { %s250_s1 = scalar_lea.vmem %s188_s8, 128  ;;  %p255_p1 = scmp.lt.s32.totalorder %s188_s8, %s188_s8 }
   0x8   :  { %238 = vmatpush3.bf16.msra.mxu1 %v237_v12  ;;  %p251_p0 = scmp.ne.s32.totalorder %s188_s8, %s250_s1  ;;  %p256_p2 = scmp.lt.s32.totalorder %s250_s1, %s250_s1 }
   0x9   :  { %244 = vmatpush3.bf16.msra.mxu0 %v243_v13 }
   0xa   :  { %p257_p3 = por %p256_p2, %p255_p1 }
   0xb   :  { %220 = vmatmul.mubr.msk.f32.vlgmr.msra.gmra.mrb[0].mxu1 %vm31_vm1, %v26_v14 }
   0xc   :  { %231 = vmatmul.mubr.msk.f32.vlgmr.msra.gmra.mrb[0].mxu0 %vm31_vm1, %v21_v15  ;;  %p258_p4 = pnand %p257_p3, %p251_p0 }
  0xde   :  { %v101_v16 = vpop.f32.mrb[0].mxu1 }
  0xdf   :  { %v174_v17 = vpop.f32.mrb[0].mxu0  ;;  %v221_v18 = vpop.f32.mrb[1].mxu1 }
  0xe0   :  { %v175_v19 = vadd.f32 %v174_v17, %v101_v16  ;;  %v232_v20 = vpop.f32.mrb[1].mxu0 }
  0xe2   :  { %v178_v21 = vmax.f32 %v175_v19, 0.0 }
  0xe4   :  { %180 = vst.msk [vmem:[#allocation2] sm:$0xff] %vm179_vm2, %v178_v21 }
  0xe5   :  { %261 = shalt.err (!%p258_p4)
}
  0xe6   :  { %s262_s10 = scalar_lea.hbm %s349_s4, 128 }
  0xe7   :  { %p263_p5 = scmp.ne.s32.totalorder %s349_s4, %s262_s10  ;;  %p266_p6 = scmp.lt.u32.totalorder %s262_s10, %s349_s4 }
  0xe9   :  { %p268_p7 = pnand %p266_p6, %p263_p5 }
  0xeb   :  { %271 = shalt.err (!%p268_p7)
}
  0xec   :  { %190 = dma.vmem_to_hbm [thread:$0]  %s188_s8, 128, %s349_s4, [#allocation3]  }
  0xed   :  { %272 = dma.done.wait [#allocation3], 128  }
  0xee   :  { %273 = vsyncadd [#allocation3], 4294967168 }
  0xef   :  { %194 = vsyncpa [#allocation3], 1 }

</bundles_post_ra>
